<compile_context>
chip_gen: v7x
topology: tpu7x:2x2x1
jax: 0.10.0
libtpu: 0.0.40
codegen_flags: <defaults>
</compile_context>

<pallas_src>
import jax
import jax.numpy as jnp
from jax.experimental import pallas as pl
from jax.experimental.pallas import tpu as pltpu

HIDDEN = 256


def _orthogonal(key, shape, gain=1.0, dtype=jnp.float32):
    """Deterministic orthogonal init (QR-based)."""
    # TODO(synk): not bit-identical to torch.nn.init.orthogonal_ (n x n QR + slice,
    # gain fixed at 1.0); fine when trained weights are loaded instead of generated.
    rows, cols = shape
    n = max(rows, cols)
    a = jax.random.normal(key, (n, n), dtype=jnp.float32)
    q, r = jnp.linalg.qr(a)
    q = q * jnp.sign(jnp.diag(r))[None, :]
    return (gain * q[:rows, :cols]).astype(dtype)


def valuenet_kernel(x_ref, w1_ref, w2_ref, aux_ref, b3_ref, o_ref):
    """One batch block.

    x:   [bB, D]  f32   (full observation; last feature dropped via zero row of w1)
    w1:  [D, H]   bf16
    w2:  [H, H]   bf16
    aux: [3, H]   f32   rows = (b1, b2, w3)
    b3:  [1]      f32   (SMEM scalar)
    o:   [1, bB]  f32   (lane-dense output row)
    """
    x = x_ref[...].astype(jnp.bfloat16)
    b1 = aux_ref[0:1, :]          # [1, H] f32
    b2 = aux_ref[1:2, :]
    w3 = aux_ref[2:3, :]

    h1 = jnp.dot(x, w1_ref[...], preferred_element_type=jnp.float32) + b1
    h1 = jnp.maximum(h1, 0.0)     # ReLU, f32 on VPU
    h2 = jnp.dot(h1.astype(jnp.bfloat16), w2_ref[...],
                 preferred_element_type=jnp.float32) + b2
    h2 = jnp.maximum(h2, 0.0)

    # Layer 3 (256 -> 1) as a VPU multiply + lane reduce (skips a 1-lane MXU
    # matmul), then one tiny XLU transpose so the store is lane-dense.
    col = jnp.sum(h2 * w3, axis=-1, keepdims=True) + b3_ref[0]   # [bB, 1] f32
    o_ref[...] = jnp.transpose(col).astype(o_ref.dtype)          # [1, bB]


def _choose_block_b(batch):
    """Batch rows per grid step.

    <=256: single block. Otherwise 256..1024 rows (multiple of 256 so layer 2's
    256x256 bf16 rhs streams as a single MXU weight tile on v6e/v7x), chosen so
    the grid has >= 2 steps and both v7x TensorCores get work.
    """
    if batch <= 256:
        return batch
    half = (batch // 2) // 256 * 256
    return max(256, min(1024, half))


def value_net_forward(x, params):
    """x: [B, input_size] f32 (full observation; last feature dropped inside kernel)."""
    w1, w2, aux, b3 = params
    B, D = x.shape

    block_b = _choose_block_b(B)
    num_blocks = pl.cdiv(B, block_b)
    padded_b = num_blocks * block_b
    if padded_b != B:
        # Ragged batch: zero-pad to a block multiple (no-op for the common
        # power-of-two batch sizes). Keeps every block bounded instead of one
        # huge VMEM-blowing block.
        x = jnp.pad(x, ((0, padded_b - B), (0, 0)))

    flops = 2 * B * ((D - 1) * HIDDEN + HIDDEN * HIDDEN + HIDDEN)
    bytes_accessed = (
        x.size * x.dtype.itemsize
        + sum(p.size * p.dtype.itemsize for p in params)
        + padded_b * 4  # output
    )

    out = pl.pallas_call(
        valuenet_kernel,
        out_shape=jax.ShapeDtypeStruct((1, padded_b), jnp.float32),
        grid=(num_blocks,),
        in_specs=[
            pl.BlockSpec((block_b, D), lambda i: (i, 0)),      # x, tiled over batch
            pl.BlockSpec(w1.shape, lambda i: (0, 0)),          # w1 (VMEM-resident)
            pl.BlockSpec(w2.shape, lambda i: (0, 0)),          # w2 (VMEM-resident)
            pl.BlockSpec(aux.shape, lambda i: (0, 0)),         # packed (b1, b2, w3)
            pl.BlockSpec(memory_space=pltpu.MemorySpace.SMEM), # b3 scalar in SMEM
        ],
        out_specs=pl.BlockSpec((1, block_b), lambda i: (0, i)),  # lane-dense row
        compiler_params=pltpu.CompilerParams(
            dimension_semantics=("parallel",)),
        cost_estimate=pl.CostEstimate(
            flops=flops, transcendentals=0, bytes_accessed=bytes_accessed),
    )(x, w1, w2, aux, b3)

    # [1, padded_b] -> [B, 1]
    return out.reshape(padded_b, 1)[:B]


def make_params(key, input_size, hidden=HIDDEN):
    d_in = input_size - 1
    k1, k2, k3, kb1, kb2, kb3 = jax.random.split(key, 6)
    w1 = _orthogonal(k1, (d_in, hidden))
    # Fuse `input[:, :-1]`: append a zero row so the dropped last feature
    # contributes nothing to the first matmul.
    w1 = jnp.concatenate([w1, jnp.zeros((1, hidden), jnp.float32)], axis=0)
    w2 = _orthogonal(k2, (hidden, hidden))
    w3 = _orthogonal(k3, (hidden, 1))
    # Small nonzero biases so the bias paths (incl. the SMEM scalar) are exercised.
    b1 = (0.01 * jax.random.normal(kb1, (hidden,))).astype(jnp.float32)
    b2 = (0.01 * jax.random.normal(kb2, (hidden,))).astype(jnp.float32)
    b3 = (0.01 * jax.random.normal(kb3, (1,))).astype(jnp.float32)
    # bf16 weights halve DMA/VMEM; the kernel keeps f32 accumulation.
    w1_bf = w1.astype(jnp.bfloat16)                          # [input_size, hidden]
    w2_bf = w2.astype(jnp.bfloat16)                          # [hidden, hidden]
    # Pack the three small per-feature vectors into one (3, hidden) f32 operand:
    # row 0 = b1, row 1 = b2, row 2 = w3 row (for the VPU reduce).
    aux = jnp.stack([b1, b2, w3[:, 0]], axis=0).astype(jnp.float32)
    return (w1_bf, w2_bf, aux, b3)


def reference_forward(x, params):
    """Pure-JAX reference mirroring the kernel's precision (bf16 weights, f32 accum)."""
    w1, w2, aux, b3 = params
    b1, b2, w3 = aux[0:1], aux[1:2], aux[2:3]
    h = jnp.dot(x.astype(jnp.bfloat16), w1, preferred_element_type=jnp.float32) + b1
    h = jnp.maximum(h, 0.0)
    h = jnp.dot(h.astype(jnp.bfloat16), w2, preferred_element_type=jnp.float32) + b2
    h = jnp.maximum(h, 0.0)
    return jnp.sum(h * w3, axis=-1, keepdims=True) + b3[0]


if __name__ == "__main__":
    key = jax.random.PRNGKey(0)
    k_params, k_x1, k_x2 = jax.random.split(key, 3)

    input_size = 33  # obs_shape = (33,); net consumes input_size - 1 = 32 features
    params = make_params(k_params, input_size)

    # Small batch: single block, lane-dense (1, 8) output.
    x_small = jax.random.normal(k_x1, (8, input_size), dtype=jnp.float32)
    out_small = jax.block_until_ready(value_net_forward(x_small, params))
    ref_small = reference_forward(x_small, params)
    assert out_small.shape == (8, 1), out_small.shape
    assert jnp.allclose(out_small, ref_small, atol=1e-2, rtol=1e-2), (out_small, ref_small)

    # Larger batch: 2 grid steps of 256 rows (exercises batch tiling, the
    # parallel grid axis, and the lane-dense multi-block output path).
    x_big = jax.random.normal(k_x2, (512, input_size), dtype=jnp.float32)
    out_big = jax.block_until_ready(value_net_forward(x_big, params))
    ref_big = reference_forward(x_big, params)
    assert out_big.shape == (512, 1), out_big.shape
    assert jnp.allclose(out_big, ref_big, atol=1e-2, rtol=1e-2), (out_big, ref_big)

    print("KERNEL_OK")
</pallas_src>

<mosaic_0001>
module attributes {stable_mosaic.version = 11 : i64} {
  func.func @valuenet_kernel(%arg0: i32, %arg1: memref<8x33xf32, #tpu.memory_space<vmem>>, %arg2: memref<33x256xbf16, #tpu.memory_space<vmem>>, %arg3: memref<256x256xbf16, #tpu.memory_space<vmem>>, %arg4: memref<3x256xf32, #tpu.memory_space<vmem>>, %arg5: memref<1xf32, #tpu.memory_space<smem>>, %arg6: memref<1x8xf32, #tpu.memory_space<vmem>>) attributes {dimension_semantics = [#tpu.dimension_semantics<parallel>], iteration_bounds = array<i64: 1>, scalar_prefetch = 0 : i64, scratch_operands = 0 : i64, tpu.core_type = #tpu.core_type<tc>, window_params = [{transform_indices = @transform_0, window_bounds = array<i64: 8, 33>}, {pipeline_mode = #tpu.pipeline_mode<synchronous>, transform_indices = @transform_1, window_bounds = array<i64: 33, 256>}, {pipeline_mode = #tpu.pipeline_mode<synchronous>, transform_indices = @transform_2, window_bounds = array<i64: 256, 256>}, {pipeline_mode = #tpu.pipeline_mode<synchronous>, transform_indices = @transform_3, window_bounds = array<i64: 3, 256>}, {transform_indices = @transform_4, window_bounds = array<i64: 1>}, {transform_indices = @transform_5, window_bounds = array<i64: 1, 8>}]} {
    %c0 = arith.constant 0 : index
    %c0_0 = arith.constant 0 : index
    %0 = vector.load %arg1[%c0, %c0_0] : memref<8x33xf32, #tpu.memory_space<vmem>>, vector<8x33xf32>
    %1 = arith.truncf %0 : vector<8x33xf32> to vector<8x33xbf16>
    %c0_1 = arith.constant 0 : index
    %c0_2 = arith.constant 0 : index
    %2 = vector.load %arg4[%c0_1, %c0_2] : memref<3x256xf32, #tpu.memory_space<vmem>>, vector<1x256xf32>
    %c1 = arith.constant 1 : index
    %c0_3 = arith.constant 0 : index
    %3 = vector.load %arg4[%c1, %c0_3] : memref<3x256xf32, #tpu.memory_space<vmem>>, vector<1x256xf32>
    %c2 = arith.constant 2 : index
    %c0_4 = arith.constant 0 : index
    %4 = vector.load %arg4[%c2, %c0_4] : memref<3x256xf32, #tpu.memory_space<vmem>>, vector<1x256xf32>
    %c0_5 = arith.constant 0 : index
    %c0_6 = arith.constant 0 : index
    %5 = vector.load %arg2[%c0_5, %c0_6] : memref<33x256xbf16, #tpu.memory_space<vmem>>, vector<33x256xbf16>
    %cst = arith.constant dense<0.000000e+00> : vector<8x256xf32>
    %6 = tpu.matmul %1, %5, %cst {dimension_numbers = #tpu.dot_dimension_numbers<[1], [0], [0], [1], [0, 0, 1, 1], [], []>} : vector<8x33xbf16>, vector<33x256xbf16>, vector<8x256xf32> -> vector<8x256xf32>
    %7 = vector.broadcast %2 : vector<1x256xf32> to vector<8x256xf32>
    %8 = arith.addf %6, %7 : vector<8x256xf32>
    %cst_7 = arith.constant 0.000000e+00 : f32
    %9 = vector.broadcast %cst_7 : f32 to vector<8x256xf32>
    %10 = arith.maximumf %8, %9 : vector<8x256xf32>
    %11 = arith.truncf %10 : vector<8x256xf32> to vector<8x256xbf16>
    %c0_8 = arith.constant 0 : index
    %c0_9 = arith.constant 0 : index
    %12 = vector.load %arg3[%c0_8, %c0_9] : memref<256x256xbf16, #tpu.memory_space<vmem>>, vector<256x256xbf16>
    %cst_10 = arith.constant dense<0.000000e+00> : vector<8x256xf32>
    %13 = tpu.matmul %11, %12, %cst_10 {dimension_numbers = #tpu.dot_dimension_numbers<[1], [0], [0], [1], [0, 0, 1, 1], [], []>} : vector<8x256xbf16>, vector<256x256xbf16>, vector<8x256xf32> -> vector<8x256xf32>
    %14 = vector.broadcast %3 : vector<1x256xf32> to vector<8x256xf32>
    %15 = arith.addf %13, %14 : vector<8x256xf32>
    %cst_11 = arith.constant 0.000000e+00 : f32
    %16 = vector.broadcast %cst_11 : f32 to vector<8x256xf32>
    %17 = arith.maximumf %15, %16 : vector<8x256xf32>
    %18 = vector.broadcast %4 : vector<1x256xf32> to vector<8x256xf32>
    %19 = arith.mulf %17, %18 : vector<8x256xf32>
    %cst_12 = arith.constant dense<0.000000e+00> : vector<8xf32>
    %20 = vector.multi_reduction <add>, %19, %cst_12 [1] : vector<8x256xf32> to vector<8xf32>
    %21 = vector.shape_cast %20 : vector<8xf32> to vector<8x1xf32>
    %c0_13 = arith.constant 0 : index
    %22 = memref.load %arg5[%c0_13] : memref<1xf32, #tpu.memory_space<smem>>
    %23 = vector.broadcast %22 : f32 to vector<8x1xf32>
    %24 = arith.addf %21, %23 : vector<8x1xf32>
    %25 = tpu.transpose %24, [1, 0] : vector<8x1xf32> -> vector<1x8xf32>
    %c0_14 = arith.constant 0 : index
    %c0_15 = arith.constant 0 : index
    %26 = vector.load %arg6[%c0_14, %c0_15] : memref<1x8xf32, #tpu.memory_space<vmem>>, vector<1x8xf32>
    tpu.vector_store %arg6[%c0_14, %c0_15], %25 {strides = array<i32>} : memref<1x8xf32, #tpu.memory_space<vmem>>, vector<1x8xf32>,
    return
  }
  func.func @transform_0(%arg0: i32) -> (i32, i32) {
    %c0_i32 = arith.constant 0 : i32
    %c0_i32_0 = arith.constant 0 : i32
    return %arg0, %c0_i32 : i32, i32
  }
  func.func @transform_1(%arg0: i32) -> (i32, i32) {
    %c0_i32 = arith.constant 0 : i32
    %c0_i32_0 = arith.constant 0 : i32
    %c0_i32_1 = arith.constant 0 : i32
    return %c0_i32, %c0_i32_0 : i32, i32
  }
  func.func @transform_2(%arg0: i32) -> (i32, i32) {
    %c0_i32 = arith.constant 0 : i32
    %c0_i32_0 = arith.constant 0 : i32
    %c0_i32_1 = arith.constant 0 : i32
    return %c0_i32, %c0_i32_0 : i32, i32
  }
  func.func @transform_3(%arg0: i32) -> (i32, i32) {
    %c0_i32 = arith.constant 0 : i32
    %c0_i32_0 = arith.constant 0 : i32
    %c0_i32_1 = arith.constant 0 : i32
    return %c0_i32, %c0_i32_0 : i32, i32
  }
  func.func @transform_4(%arg0: i32) -> i32 {
    %c0_i32 = arith.constant 0 : i32
    %c0_i32_0 = arith.constant 0 : i32
    return %c0_i32 : i32
  }
  func.func @transform_5(%arg0: i32) -> (i32, i32) {
    %c0_i32 = arith.constant 0 : i32
    %c0_i32_0 = arith.constant 0 : i32
    return %c0_i32, %arg0 : i32, i32
  }
}

</mosaic_0001>

<bundles_post_ra>
// kernel: tpu_custom_call.1
= control target key start
LH: loop header
LB: loop body
LE: loop exit
PB: predicated region body
PF: predicated region fallthrough
CT: control target
= control target key end

     0   :  { %11 = vsyncpa [#allocation4], 0  ;;  %s785_s0 = inlined_call_operand.hbm [shape: f32[8,33], index: 0, kind: input, shape index: {}]   ;;  %s786_s1 = inlined_call_operand.hbm [shape: bf16[33,256], index: 1, kind: input, shape index: {}]   ;;  %s787_s2 = inlined_call_operand.hbm [shape: bf16[256,256], index: 2, kind: input, shape index: {}]   ;;  %s788_s3 = inlined_call_operand.vmem [shape: f32[3,256], index: 3, kind: input, shape index: {}]   ;;  %s789_s4 = inlined_call_operand.<no memory space> [shape: f32[1], index: 4, kind: input, shape index: {}]   ;;  %s790_s5 = inlined_call_operand.hbm [shape: f32[1,8], index: 5, kind: output, shape index: {}]  }
   0x1   :  { %12 = vsyncpa [#allocation7], 0 }
   0x2   :  { %13 = vsyncpa [#allocation5], 0  ;;  %s682_s18 = smov [#allocation6]   ;;  %s588_s22 = scalar_lea.hbm %s786_s1, 640 }
   0x3   :  { %s29_s19 = sshll.u32 %s682_s18, 4  ;;  %p589_p0 = scmp.ne.s32.totalorder %s786_s1, %s588_s22  ;;  %s30_s19 = int_to_ptr.vmem [resolvable:$true] %s29_s19 }
   0x4   :  { %p592_p1 = scmp.lt.u32.totalorder %s588_s22, %s786_s1 }
   0x6   :  { %p594_p2 = pnand %p592_p1, %p589_p0 }
   0x8   :  { %597 = shalt.err (!%p594_p2)
}
   0x9   :  { %s598_s27 = scalar_lea.vmem %s30_s19, 640  ;;  %p603_p4 = scmp.lt.s32.totalorder %s30_s19, %s30_s19 }
   0xa   :  { %p599_p3 = scmp.ne.s32.totalorder %s30_s19, %s598_s27  ;;  %p604_p5 = scmp.lt.s32.totalorder %s598_s27, %s598_s27 }
   0xc   :  { %p605_p6 = por %p604_p5, %p603_p4 }
   0xe   :  { %p606_p7 = pnand %p605_p6, %p599_p3 }
  0x10   :  { %609 = shalt.err (!%p606_p7)
}
  0x11   :  { %s683_s28 = smov 128   ;;  %s684_s29 = smov 8  }
  0x12   :  { %35 = dma.hbm_to_vmem [thread:$0]  %s786_s1, 640, %s30_s19, [#allocation7], %s683_s28, %s683_s28, %s684_s29  }
  0x13   :  { %s685_s7 = smov [#allocation3]   ;;  %s686_s9 = smov [#allocation8]  }
  0x14   :  { %s20_s8 = sshll.u32 %s685_s7, 4  ;;  %s41_s10 = sshll.u32 %s686_s9, 4  ;;  %s21_s8 = int_to_ptr.vmem [resolvable:$true] %s20_s8  ;;  %s42_s10 = int_to_ptr.vmem [resolvable:$true] %s41_s10 }
  0x15   :  { %s610_s13 = scalar_lea.hbm %s785_s0, 128 }
  0x16   :  { %p611_p8 = scmp.ne.s32.totalorder %s785_s0, %s610_s13  ;;  %p614_p9 = scmp.lt.u32.totalorder %s610_s13, %s785_s0 }
  0x18   :  { %p616_p10 = pnand %p614_p9, %p611_p8 }
  0x1a   :  { %619 = shalt.err (!%p616_p10)
}
  0x1b   :  { %s620_s1 = scalar_lea.vmem %s21_s8, 128  ;;  %p625_p12 = scmp.lt.s32.totalorder %s21_s8, %s21_s8 }
  0x1c   :  { %p621_p11 = scmp.ne.s32.totalorder %s21_s8, %s620_s1  ;;  %p626_p13 = scmp.lt.s32.totalorder %s620_s1, %s620_s1 }
  0x1e   :  { %p627_p0 = por %p626_p13, %p625_p12 }
  0x20   :  { %p628_p1 = pnand %p627_p0, %p621_p11 }
  0x22   :  { %631 = shalt.err (!%p628_p1)
}
  0x23   :  { %23 = dma.hbm_to_vmem [thread:$0]  %s785_s0, 128, %s21_s8, [#allocation4]  }
  0x24   :  { %s632_s22 = scalar_lea.hbm %s787_s2, 4096 }
  0x25   :  { %p633_p2 = scmp.ne.s32.totalorder %s787_s2, %s632_s22  ;;  %p636_p3 = scmp.lt.u32.totalorder %s632_s22, %s787_s2 }
  0x27   :  { %p638_p4 = pnand %p636_p3, %p633_p2 }
  0x29   :  { %641 = shalt.err (!%p638_p4)
}
  0x2a   :  { %s642_s27 = scalar_lea.vmem %s42_s10, 4096  ;;  %p647_p6 = scmp.lt.s32.totalorder %s42_s10, %s42_s10 }
  0x2b   :  { %p643_p5 = scmp.ne.s32.totalorder %s42_s10, %s642_s27  ;;  %p648_p7 = scmp.lt.s32.totalorder %s642_s27, %s642_s27 }
  0x2d   :  { %p649_p8 = por %p648_p7, %p647_p6 }
  0x2f   :  { %p650_p9 = pnand %p649_p8, %p643_p5 }
  0x31   :  { %653 = shalt.err (!%p650_p9)
}
  0x32   :  { %47 = dma.hbm_to_vmem [thread:$0]  %s787_s2, 4096, %s42_s10, [#allocation7], %s683_s28, %s683_s28, %s684_s29  }
  0x33   :  { %676 = dma.done.wait [#allocation4], 128  }
  0x34   :  { %677 = vsyncadd [#allocation4], 4294967168 }
  0x35   :  { %678 = dma.done.wait [#allocation7], 4736  }
  0x36   :  { %679 = vsyncadd [#allocation7], 4294962560  ;;  %v687_v0 = vmov 0   ;;  %vm114_vm0 = vcmask 1040384   ;;  %v532_v1 = vld [vmem:[#allocation6 + $0x4] ss:$8 sps:$4 sm:$0xff]   ;;  %v75_v45 = vlaneseq }
  0x37   :  { %155 = vmatprep.mubr.bf16.mxu0 %v687_v0  ;;  %v534_v2 = vld [vmem:[#allocation6] ss:$8 sps:$4 sm:$0xff]   ;;  %123 = vmatprep.subr.bf16.mxu0 %v532_v1  ;;  %v535_v3 = vld [vmem:[#allocation6 + $0x14] ss:$8 sps:$4 sm:$0xff]   ;;  %v116_v5 = vsel %vm114_vm0, 65535, %v687_v0  ;;  %vm110_vm1 = vcmask 269312  }
  0x38   :  { %v73_v4 = vld [vmem:[#allocation6 + $0x20] sm:$0x11]  ;;  %124 = vmatpush1.bf16.msra.mxu0 %v534_v2  ;;  %v537_v6 = vld [vmem:[#allocation6 + $0x10] ss:$8 sps:$4 sm:$0xff]   ;;  %v540_v9 = vld [vmem:[#allocation8 + $0x4] ss:$8 sps:$4 sm:$0xff]  }
  0x39   :  { %v490_v7 = vcombine.high %v73_v4, %v73_v4  ;;  %v489_v8 = vcombine.low %v73_v4, %v73_v4  ;;  %125 = vmatprep.subr.bf16.mxu0 %v535_v3  ;;  %v542_v10 = vld [vmem:[#allocation8] ss:$8 sps:$4 sm:$0xff]   ;;  %v543_v12 = vld [vmem:[#allocation8 + $0x14] ss:$8 sps:$4 sm:$0xff]   ;;  %371 = vmatprep.subr.bf16.mxu1 %v540_v9  ;;  %v545_v15 = vld [vmem:[#allocation8 + $0x10] ss:$8 sps:$4 sm:$0xff]  }
  0x3a   :  { %v62_v13 = vld [vmem:[#allocation3] sm:$0xff]  ;;  %372 = vmatpush1.bf16.msra.mxu1 %v542_v10  ;;  %v546_v16 = vld [vmem:[#allocation8 + $0x24] ss:$8 sps:$4 sm:$0xff]   ;;  %v548_v18 = vld [vmem:[#allocation8 + $0x20] ss:$8 sps:$4 sm:$0xff]   ;;  %v76_v46 = vshrl.u32 %v75_v45, 7 }
  0x3b   :  { %v121_v11 = vand.u32 %v490_v7, %v116_v5  ;;  %v118_v14 = vand.u32 %v489_v8, %v116_v5  ;;  %373 = vmatprep.subr.bf16.mxu1 %v543_v12  ;;  %v63_v17 = vpack.c.bf16 %v62_v13, %v62_v13  ;;  %v549_v19 = vld [vmem:[#allocation8 + $0x34] ss:$8 sps:$4 sm:$0xff]   ;;  %v551_v20 = vld [vmem:[#allocation8 + $0x30] ss:$8 sps:$4 sm:$0xff]   ;;  %v552_v21 = vld [vmem:[#allocation8 + $0x44] ss:$8 sps:$4 sm:$0xff]  }
  0x3c   :  { %126 = vmatpush1.bf16.msra.mxu0 %v537_v6  ;;  %v554_v22 = vld [vmem:[#allocation8 + $0x40] ss:$8 sps:$4 sm:$0xff]   ;;  %v555_v23 = vld [vmem:[#allocation8 + $0x54] ss:$8 sps:$4 sm:$0xff]   ;;  %v557_v24 = vld [vmem:[#allocation8 + $0x50] ss:$8 sps:$4 sm:$0xff]  }
  0x3d   :  { %127 = vmatprep.subr.bf16.mxu0 %v121_v11  ;;  %v558_v25 = vld [vmem:[#allocation8 + $0x64] ss:$8 sps:$4 sm:$0xff]   ;;  %v560_v26 = vld [vmem:[#allocation8 + $0x60] ss:$8 sps:$4 sm:$0xff]   ;;  %v561_v27 = vld [vmem:[#allocation8 + $0x74] ss:$8 sps:$4 sm:$0xff]  }
  0x3e   :  { %374 = vmatpush1.bf16.msra.mxu1 %v545_v15  ;;  %v563_v28 = vld [vmem:[#allocation8 + $0x70] ss:$8 sps:$4 sm:$0xff]   ;;  %v564_v29 = vld [vmem:[#allocation8 + $0x84] ss:$8 sps:$4 sm:$0xff]   ;;  %v566_v30 = vld [vmem:[#allocation8 + $0x80] ss:$8 sps:$4 sm:$0xff]   ;;  %v431_v15 = vstv %s789_s4 }
  0x3f   :  { %375 = vmatprep.subr.bf16.mxu1 %v546_v16  ;;  %v567_v31 = vld [vmem:[#allocation8 + $0x94] ss:$8 sps:$4 sm:$0xff]   ;;  %v569_v32 = vld [vmem:[#allocation8 + $0x90] ss:$8 sps:$4 sm:$0xff]   ;;  %v570_v33 = vld [vmem:[#allocation8 + $0xa4] ss:$8 sps:$4 sm:$0xff]  }
  0x40   :  { %128 = vmatpush1.bf16.msra.mxu0 %v118_v14  ;;  %v572_v34 = vld [vmem:[#allocation8 + $0xa0] ss:$8 sps:$4 sm:$0xff]   ;;  %v573_v35 = vld [vmem:[#allocation8 + $0xb4] ss:$8 sps:$4 sm:$0xff]   ;;  %v575_v36 = vld [vmem:[#allocation8 + $0xb0] ss:$8 sps:$4 sm:$0xff]  }
  0x41   :  { %v576_v37 = vld [vmem:[#allocation8 + $0xc4] ss:$8 sps:$4 sm:$0xff]   ;;  %v578_v38 = vld [vmem:[#allocation8 + $0xc0] ss:$8 sps:$4 sm:$0xff]   ;;  %v579_v39 = vld [vmem:[#allocation8 + $0xd4] ss:$8 sps:$4 sm:$0xff]  }
  0x42   :  { %376 = vmatpush1.bf16.msra.mxu1 %v548_v18  ;;  %v581_v40 = vld [vmem:[#allocation8 + $0xd0] ss:$8 sps:$4 sm:$0xff]   ;;  %v582_v41 = vld [vmem:[#allocation8 + $0xe4] ss:$8 sps:$4 sm:$0xff]   ;;  %v584_v42 = vld [vmem:[#allocation8 + $0xe0] ss:$8 sps:$4 sm:$0xff]  }
  0x43   :  { %491 = vmatmul.mubr.msk.bf16.vlgmr.msra.gmra.mrb[0].mxu0 %vm110_vm1, %v63_v17  ;;  %377 = vmatprep.subr.bf16.mxu1 %v549_v19  ;;  %v585_v43 = vld [vmem:[#allocation8 + $0xf4] ss:$8 sps:$4 sm:$0xff]   ;;  %v587_v44 = vld [vmem:[#allocation8 + $0xf0] ss:$8 sps:$4 sm:$0xff]   ;;  %v77_v47 = vsub.s32 0, %v76_v46  ;;  %v81_v49 = vsub.s32 1, %v76_v46 }
  0x44   :  { %v64_v48 = vld [vmem:[%s788_s3] ss:$4 sm:$0x3]  ;;  %v483_v62 = vld [vmem:[%s788_s3 + $0x1] ss:$4 sm:$0x3] }
  0x45   :  { %v78_v50 = vrot.slane %v64_v48, %v77_v47  ;;  %v82_v51 = vrot.slane %v64_v48, %v81_v49  ;;  %v204_v63 = vrot.slane %v483_v62, %v77_v47  ;;  %v208_v0 = vrot.slane %v483_v62, %v81_v49  ;;  %v484_v1 = vld [vmem:[%s788_s3 + $0x2] ss:$4 sm:$0x3]  ;;  %s688_s3 = smov [#allocation9]  }
  0x46   :  { %378 = vmatpush1.bf16.msra.mxu1 %v551_v20  ;;  %v418_v5 = vrot.slane %v484_v1, %v77_v47  ;;  %v422_v8 = vrot.slane %v484_v1, %v81_v49  ;;  %s473_s11 = sshll.u32 %s688_s3, 4  ;;  %vm465_vm2 = vcmask 57344   ;;  %s474_s11 = int_to_ptr.vmem [resolvable:$true] %s473_s11 }
  0x47   :  { %379 = vmatprep.subr.bf16.mxu1 %v552_v21  ;;  %s654_s12 = scalar_lea.vmem %s474_s11, 16  ;;  %s658_s13 = scalar_lea.vmem %s474_s11, 32 }
  0x48   :  { %p655_p10 = scmp.ne.s32.totalorder %s474_s11, %s654_s12  ;;  %p659_p11 = scmp.lt.s32.totalorder %s474_s11, %s474_s11 }
  0x49   :  { %p660_p12 = scmp.lt.s32.totalorder %s658_s13, %s654_s12 }
  0x4a   :  { %380 = vmatpush1.bf16.msra.mxu1 %v554_v22 }
  0x4b   :  { %381 = vmatprep.subr.bf16.mxu1 %v555_v23  ;;  %p661_p13 = por %p660_p12, %p659_p11 }
  0x4d   :  { %p662_p0 = pnand %p661_p13, %p655_p10 }
  0x4e   :  { %382 = vmatpush1.bf16.msra.mxu1 %v557_v24 }
  0x4f   :  { %383 = vmatprep.subr.bf16.mxu1 %v558_v25 }
  0x52   :  { %384 = vmatpush1.bf16.msra.mxu1 %v560_v26 }
  0x53   :  { %385 = vmatprep.subr.bf16.mxu1 %v561_v27 }
  0x56   :  { %386 = vmatpush1.bf16.msra.mxu1 %v563_v28 }
  0x57   :  { %387 = vmatprep.subr.bf16.mxu1 %v564_v29 }
  0x5a   :  { %388 = vmatpush1.bf16.msra.mxu1 %v566_v30 }
  0x5b   :  { %389 = vmatprep.subr.bf16.mxu1 %v567_v31 }
  0x5e   :  { %390 = vmatpush1.bf16.msra.mxu1 %v569_v32 }
  0x5f   :  { %391 = vmatprep.subr.bf16.mxu1 %v570_v33 }
  0x62   :  { %392 = vmatpush1.bf16.msra.mxu1 %v572_v34 }
  0x63   :  { %393 = vmatprep.subr.bf16.mxu1 %v573_v35 }
  0x66   :  { %394 = vmatpush1.bf16.msra.mxu1 %v575_v36 }
  0x67   :  { %395 = vmatprep.subr.bf16.mxu1 %v576_v37 }
  0x6a   :  { %396 = vmatpush1.bf16.msra.mxu1 %v578_v38 }
  0x6b   :  { %397 = vmatprep.subr.bf16.mxu1 %v579_v39 }
  0x6e   :  { %398 = vmatpush1.bf16.msra.mxu1 %v581_v40 }
  0x6f   :  { %399 = vmatprep.subr.bf16.mxu1 %v582_v41 }
  0x72   :  { %400 = vmatpush1.bf16.msra.mxu1 %v584_v42 }
  0x73   :  { %401 = vmatprep.subr.bf16.mxu1 %v585_v43 }
  0x76   :  { %402 = vmatpush1.bf16.msra.mxu1 %v587_v44 }
 0x116   :  { %v157_v52 = vpop.f32.mrb[0].mxu0 }
 0x117   :  { %v158_v53 = vadd.f32 %v157_v52, %v78_v50  ;;  %v159_v54 = vpop.f32.mrb[1].mxu0 }
 0x118   :  { %v160_v55 = vadd.f32 %v159_v54, %v82_v51  ;;  %v161_v56 = vpop.f32.mrb[2].mxu0 }
 0x119   :  { %v164_v57 = vmax.f32 %v158_v53, 0.0  ;;  %v162_v58 = vpop.f32.mrb[3].mxu0 }
 0x11a   :  { %v165_v59 = vmax.f32 %v160_v55, 0.0 }
 0x11b   :  { %v166_v61 = vpack.c.bf16 %v164_v57, %v164_v57 }
 0x11c   :  { %v167_v60 = vpack.c.bf16 %v165_v59, %v165_v59 }
 0x11e   :  { %403 = vmatprep.mubr.bf16.mxu1 %v167_v60 }
 0x11f   :  { %404 = vmatmul.mubr.bf16.vlgmr.msra.gmra.mrb[0].mxu1 %v166_v61 }
 0x1f2   :  { %v405_v2 = vpop.f32.mrb[0].mxu1 }
 0x1f3   :  { %v406_v3 = vadd.f32 %v405_v2, %v204_v63  ;;  %v407_v4 = vpop.f32.mrb[1].mxu1 }
 0x1f4   :  { %v408_v6 = vadd.f32 %v407_v4, %v208_v0  ;;  %v409_v7 = vpop.f32.mrb[2].mxu1 }
 0x1f5   :  { %v412_v9 = vmax.f32 %v406_v3, 0.0  ;;  %v410_v10 = vpop.f32.mrb[3].mxu1 }
 0x1f6   :  { %v413_v11 = vmax.f32 %v408_v6, 0.0 }
 0x1f7   :  { %v425_v12 = vmul.f32 %v418_v5, %v412_v9 }
 0x1f8   :  { %v426_v13 = vmul.f32 %v422_v8, %v413_v11 }
 0x1fa   :  { %v427_v14 = vadd.f32 %v426_v13, %v425_v12 }
 0x1fc   :  { %428 = vadd.xlane.f32.xlu0 %v427_v14 }
 0x289   :  { %v429_v16 = vpop.xlane.xlu0 %428 }
 0x28a   :  { %v432_v17 = vadd.f32 %v431_v15, %v429_v16 }
 0x28c   :  { %433 = vxpose.xlu0.b32.start.end [1/1] (short) (narrow) %v432_v17, 8 }
 0x30c   :  { %v449_v18 = vpop.trf.xlu0 }
 0x30d   :  { %466 = vst.msk [vmem:[#allocation9] sm:$0x1] %vm465_vm2, %v449_v18 }
 0x30e   :  { %665 = shalt.err (!%p662_p0)
}
 0x30f   :  { %s666_s4 = scalar_lea.hbm %s790_s5, 16 }
 0x310   :  { %p667_p1 = scmp.ne.s32.totalorder %s790_s5, %s666_s4  ;;  %p670_p2 = scmp.lt.u32.totalorder %s666_s4, %s790_s5 }
 0x312   :  { %p672_p3 = pnand %p670_p2, %p667_p1 }
 0x314   :  { %675 = shalt.err (!%p672_p3)
}
 0x315   :  { %476 = dma.vmem_to_hbm [thread:$0]  %s474_s11, 16, %s790_s5, [#allocation5]  }
 0x316   :  { %680 = dma.done.wait [#allocation5], 16  }
 0x317   :  { %681 = vsyncadd [#allocation5], 4294967280 }
 0x318   :  { %480 = vsyncpa [#allocation4], 1 }
 0x319   :  { %481 = vsyncpa [#allocation7], 1 }
 0x31a   :  { %482 = vsyncpa [#allocation5], 1 }

</bundles_post_ra>
